<compile_context>
chip_gen: v5e
topology: v5e:2x2
jax: 0.10.0
libtpu: 0.0.40
codegen_flags: <defaults>
</compile_context>

<pallas_src>
import functools

import jax
import jax.numpy as jnp
from jax.experimental import pallas as pl
from jax.experimental.pallas import tpu as pltpu

B, C_IN, H, W_SP = 2, 4, 16, 16          # small NCHW input, consistent with a CNN model
D = C_IN * H * W_SP                      # 1024
NUM_CLASSES = 10

_LANE = 128          # pad class dim to one full lane-width vreg
_NEG_BIG = -1e30     # padded-class bias: exp(pad - rowmax) underflows to exactly 0


def _model_grad_kernel(x_ref, w_ref, wt_ref, b_ref, y_ref, gx_ref, *, inv_batch):
    """Fused: logits -> softmax -> dL/dlogits -> dL/dx for one batch tile.

    x_ref:  (BT, D)        flattened input tile
    w_ref:  (D, CP)        class-padded linear weight       (resident)
    wt_ref: (CP, D)        pre-transposed padded weight     (resident)
    b_ref:  (1, CP) f32    padded bias (-1e30 on pad lanes) (resident)
    y_ref:  (BT, 1) int32  integer class labels for this tile
    gx_ref: (BT, D) f32    output: d(mean-CE)/dx for this tile
    """
    x = x_ref[...]

    # forward: logits = x @ W + b   (MXU).  Padded classes get logit ~ -1e30.
    logits = jnp.dot(x, w_ref[...], preferred_element_type=jnp.float32) + b_ref[...]

    # numerically stable softmax; padded lanes contribute exp() == 0 exactly,
    # so the denominator equals the unpadded one.  Divide goes to the EUP.
    m = jnp.max(logits, axis=-1, keepdims=True)
    e = jnp.exp(logits - m)
    inv_denom = pl.reciprocal(jnp.sum(e, axis=-1, keepdims=True), approx=False)

    # one-hot mask built in-kernel from integer labels (no HBM one-hot tensor);
    # labels < NUM_CLASSES so padded lanes never match.
    classes = jax.lax.broadcasted_iota(jnp.int32, logits.shape, 1)      # (BT, CP)
    onehot = classes == y_ref[...]                                      # (BT, 1) broadcast

    # d(mean cross-entropy)/d logits = (softmax - one_hot) / B_total,
    # with 1/B_total folded into the per-row softmax scale.  Padded lanes are 0.
    g = e * (inv_denom * inv_batch) - jnp.where(onehot, inv_batch, 0.0)

    # backward to the input: dL/dx = g @ W^T   (MXU, pre-transposed operand;
    # padded rows of W^T are zero so they contribute nothing).
    gx_ref[...] = jnp.dot(g.astype(wt_ref.dtype), wt_ref[...],
                          preferred_element_type=jnp.float32)


def model_grad(x_nchw, y_labels, w, b, *, desired_tile=1024,
               compute_dtype=jnp.float32):
    """Pallas equivalent of ModelGrad.forward(x, y_true=y_labels)."""
    bsz = x_nchw.shape[0]
    d = 1
    for s in x_nchw.shape[1:]:
        d *= s
    num_classes = w.shape[1]
    cp = ((max(num_classes, _LANE) + _LANE - 1) // _LANE) * _LANE   # lane-dense classes

    in_item = jnp.dtype(compute_dtype).itemsize

    # compute_dtype=jnp.bfloat16 halves x/W DMA traffic (accumulation stays f32) but
    # breaks the 1e-5 allclose check, so it is off by default.
    x_flat = x_nchw.reshape(bsz, -1).astype(compute_dtype)
    # Class-dim padding: zero weight columns + large-negative bias on padded classes
    # (correctness-critical: keeps the softmax denominator exact).
    w_pad = jnp.zeros((d, cp), jnp.float32).at[:, :num_classes].set(
        w.astype(jnp.float32)).astype(compute_dtype)
    wt_pad = w_pad.T                                   # transposed once here, not in-kernel
    b_pad = jnp.full((1, cp), _NEG_BIG, jnp.float32).at[0, :num_classes].set(
        b.astype(jnp.float32))
    y2d = y_labels.reshape(bsz, 1).astype(jnp.int32)

    # ---- batch tile selection (perf-review driven) --------------------------------
    #  * big tiles amortize the ~0.35 us per-grid-step overhead and approach the HBM
    #    roofline (tiled-copy efficiency needs >=512-wide tiles on v5e/v6e),
    #  * keep >=2 grid steps whenever the batch allows so the "parallel" axis can be
    #    sharded across v7x's two TensorCores,
    #  * respect a conservative VMEM budget (v7x has only 64 MiB physical VMEM).
    def vmem_need(bt_):
        stream = 2 * bt_ * d * in_item + 2 * bt_ * d * 4            # x + gx, double-buffered
        resident = 2 * (2 * d * cp * in_item + cp * 4 + bt_ * 4)    # W, W^T, bias, labels
        return stream + resident + (2 << 20)                        # slack

    if bsz <= 8:
        bt = bsz
    else:
        bt = min(desired_tile, bsz)
        if bsz >= 16:
            bt = min(bt, (bsz + 1) // 2)          # >= 2 grid steps for megacore sharding
        bt = max(8, (bt // 8) * 8)                # sublane-aligned
        budget = 40 << 20                         # fits every generation's physical VMEM
        while bt > 8 and vmem_need(bt) > budget:
            bt = max(8, ((bt // 2) // 8) * 8)
    grid = (pl.cdiv(bsz, bt),)
    vmem_limit = int(min(max(vmem_need(bt) + (4 << 20), 16 << 20), 48 << 20))

    kernel = functools.partial(_model_grad_kernel, inv_batch=1.0 / bsz)

    gx = pl.pallas_call(
        kernel,
        out_shape=jax.ShapeDtypeStruct((bsz, d), jnp.float32),
        grid=grid,
        in_specs=[
            pl.BlockSpec((bt, d), lambda i: (i, 0)),    # x: tiled over batch
            pl.BlockSpec((d, cp), lambda i: (0, 0)),    # padded W      (resident)
            pl.BlockSpec((cp, d), lambda i: (0, 0)),    # padded W^T    (resident)
            pl.BlockSpec((1, cp), lambda i: (0, 0)),    # padded bias   (resident)
            pl.BlockSpec((bt, 1), lambda i: (i, 0)),    # labels: tiled over batch
        ],
        out_specs=pl.BlockSpec((bt, d), lambda i: (i, 0)),
        compiler_params=pltpu.CompilerParams(
            dimension_semantics=("parallel",),          # megacore-shard batch axis
            vmem_limit_bytes=vmem_limit,                # big tiles need > default scoped VMEM
        ),
    )(x_flat, w_pad, wt_pad, b_pad, y2d)

    return gx.reshape(x_nchw.shape)


def _reference_grad(x_nchw, y_labels, w, b):
    """Pure-JAX reference: autodiff through model+loss, like torch.autograd.grad."""
    num_classes = w.shape[1]

    def loss_fn(x):
        logits = x.reshape(x.shape[0], -1) @ w + b
        logp = jax.nn.log_softmax(logits, axis=-1)
        y1h = jax.nn.one_hot(y_labels, num_classes, dtype=jnp.float32)
        return -jnp.mean(jnp.sum(y1h * logp, axis=-1))

    return jax.grad(loss_fn)(x_nchw)


if __name__ == "__main__":
    key = jax.random.PRNGKey(0)
    kx, kw, kb, ky = jax.random.split(key, 4)

    # Primary case: the module's small shapes (batch=2).
    x = jax.random.normal(kx, (B, C_IN, H, W_SP), dtype=jnp.float32)
    w = jax.random.normal(kw, (D, NUM_CLASSES), dtype=jnp.float32) * 0.05
    b = jax.random.normal(kb, (NUM_CLASSES,), dtype=jnp.float32) * 0.01
    y = jax.random.randint(ky, (B,), 0, NUM_CLASSES)

    grad_kernel = jax.block_until_ready(model_grad(x, y, w, b))
    grad_ref = jax.block_until_ready(_reference_grad(x, y, w, b))
    assert grad_kernel.shape == x.shape
    assert jnp.allclose(grad_kernel, grad_ref, rtol=1e-5, atol=1e-5), (
        float(jnp.max(jnp.abs(grad_kernel - grad_ref))))

    # Secondary check: large batch -> bt=1024, grid=(2,).  Exercises the big-tile
    # path (4 MB x / 4 MB gx slabs per step), the raised vmem_limit_bytes, and the
    # 2-step "parallel" grid (one step per v7x TensorCore).
    kx2, ky2 = jax.random.split(jax.random.PRNGKey(1), 2)
    bsz2 = 2048
    xb = jax.random.normal(kx2, (bsz2, C_IN, H, W_SP), dtype=jnp.float32)
    yb = jax.random.randint(ky2, (bsz2,), 0, NUM_CLASSES)
    gb_kernel = jax.block_until_ready(model_grad(xb, yb, w, b))
    gb_ref = jax.block_until_ready(_reference_grad(xb, yb, w, b))
    assert jnp.allclose(gb_kernel, gb_ref, rtol=1e-5, atol=1e-5), (
        float(jnp.max(jnp.abs(gb_kernel - gb_ref))))

    print("KERNEL_OK")
</pallas_src>

<mosaic_0001>
module attributes {stable_mosaic.version = 11 : i64} {
  func.func @_model_grad_kernel(%arg0: i32, %arg1: memref<2x1024xf32, #tpu.memory_space<vmem>>, %arg2: memref<1024x128xf32, #tpu.memory_space<vmem>>, %arg3: memref<128x1024xf32, #tpu.memory_space<vmem>>, %arg4: memref<1x128xf32, #tpu.memory_space<vmem>>, %arg5: memref<2x1xi32, #tpu.memory_space<vmem>>, %arg6: memref<2x1024xf32, #tpu.memory_space<vmem>>) attributes {dimension_semantics = [#tpu.dimension_semantics<parallel>], iteration_bounds = array<i64: 1>, scalar_prefetch = 0 : i64, scratch_operands = 0 : i64, tpu.core_type = #tpu.core_type<tc>, window_params = [{transform_indices = @transform_0, window_bounds = array<i64: 2, 1024>}, {pipeline_mode = #tpu.pipeline_mode<synchronous>, transform_indices = @transform_1, window_bounds = array<i64: 1024, 128>}, {pipeline_mode = #tpu.pipeline_mode<synchronous>, transform_indices = @transform_2, window_bounds = array<i64: 128, 1024>}, {pipeline_mode = #tpu.pipeline_mode<synchronous>, transform_indices = @transform_3, window_bounds = array<i64: 1, 128>}, {transform_indices = @transform_4, window_bounds = array<i64: 2, 1>}, {transform_indices = @transform_5, window_bounds = array<i64: 2, 1024>}]} {
    %c0 = arith.constant 0 : index
    %c0_0 = arith.constant 0 : index
    %0 = vector.load %arg1[%c0, %c0_0] : memref<2x1024xf32, #tpu.memory_space<vmem>>, vector<2x1024xf32>
    %c0_1 = arith.constant 0 : index
    %c0_2 = arith.constant 0 : index
    %1 = vector.load %arg2[%c0_1, %c0_2] : memref<1024x128xf32, #tpu.memory_space<vmem>>, vector<1024x128xf32>
    %cst = arith.constant dense<0.000000e+00> : vector<2x128xf32>
    %2 = tpu.matmul %0, %1, %cst {dimension_numbers = #tpu.dot_dimension_numbers<[1], [0], [0], [1], [0, 0, 1, 1], [], []>} : vector<2x1024xf32>, vector<1024x128xf32>, vector<2x128xf32> -> vector<2x128xf32>
    %c0_3 = arith.constant 0 : index
    %c0_4 = arith.constant 0 : index
    %3 = vector.load %arg4[%c0_3, %c0_4] : memref<1x128xf32, #tpu.memory_space<vmem>>, vector<1x128xf32>
    %4 = vector.broadcast %3 : vector<1x128xf32> to vector<2x128xf32>
    %5 = arith.addf %2, %4 : vector<2x128xf32>
    %cst_5 = arith.constant dense<0xFF800000> : vector<2xf32>
    %6 = vector.multi_reduction <maximumf>, %5, %cst_5 [1] : vector<2x128xf32> to vector<2xf32>
    %7 = vector.shape_cast %6 : vector<2xf32> to vector<2x1xf32>
    %8 = vector.broadcast %7 : vector<2x1xf32> to vector<2x128xf32>
    %9 = arith.subf %5, %8 : vector<2x128xf32>
    %10 = math.exp %9 : vector<2x128xf32>
    %cst_6 = arith.constant dense<0.000000e+00> : vector<2xf32>
    %11 = vector.multi_reduction <add>, %10, %cst_6 [1] : vector<2x128xf32> to vector<2xf32>
    %12 = vector.shape_cast %11 : vector<2xf32> to vector<2x1xf32>
    %13 = tpu.reciprocal %12 : vector<2x1xf32> -> vector<2x1xf32>
    %14 = tpu.iota {dimensions = array<i32: 1>} : vector<2x128xi32>
    %c0_7 = arith.constant 0 : index
    %c0_8 = arith.constant 0 : index
    %15 = vector.load %arg5[%c0_7, %c0_8] : memref<2x1xi32, #tpu.memory_space<vmem>>, vector<2x1xi32>
    %16 = vector.broadcast %15 : vector<2x1xi32> to vector<2x128xi32>
    %17 = arith.cmpi eq, %14, %16 : vector<2x128xi32>
    %cst_9 = arith.constant 5.000000e-01 : f32
    %18 = vector.broadcast %cst_9 : f32 to vector<2x1xf32>
    %19 = arith.mulf %13, %18 : vector<2x1xf32>
    %20 = vector.broadcast %19 : vector<2x1xf32> to vector<2x128xf32>
    %21 = arith.mulf %10, %20 : vector<2x128xf32>
    %cst_10 = arith.constant 5.000000e-01 : f32
    %cst_11 = arith.constant 0.000000e+00 : f32
    %22 = vector.broadcast %cst_10 : f32 to vector<2x128xf32>
    %23 = vector.broadcast %cst_11 : f32 to vector<2x128xf32>
    %24 = arith.select %17, %22, %23 : vector<2x128xi1>, vector<2x128xf32>
    %25 = arith.subf %21, %24 : vector<2x128xf32>
    %c0_12 = arith.constant 0 : index
    %c0_13 = arith.constant 0 : index
    %26 = vector.load %arg3[%c0_12, %c0_13] : memref<128x1024xf32, #tpu.memory_space<vmem>>, vector<128x1024xf32>
    %cst_14 = arith.constant dense<0.000000e+00> : vector<2x1024xf32>
    %27 = tpu.matmul %25, %26, %cst_14 {dimension_numbers = #tpu.dot_dimension_numbers<[1], [0], [0], [1], [0, 0, 1, 1], [], []>} : vector<2x128xf32>, vector<128x1024xf32>, vector<2x1024xf32> -> vector<2x1024xf32>
    %c0_15 = arith.constant 0 : index
    %c0_16 = arith.constant 0 : index
    %28 = vector.load %arg6[%c0_15, %c0_16] : memref<2x1024xf32, #tpu.memory_space<vmem>>, vector<2x1024xf32>
    tpu.vector_store %arg6[%c0_15, %c0_16], %27 {strides = array<i32>} : memref<2x1024xf32, #tpu.memory_space<vmem>>, vector<2x1024xf32>,
    return
  }
  func.func @transform_0(%arg0: i32) -> (i32, i32) {
    %c0_i32 = arith.constant 0 : i32
    %c0_i32_0 = arith.constant 0 : i32
    return %arg0, %c0_i32 : i32, i32
  }
  func.func @transform_1(%arg0: i32) -> (i32, i32) {
    %c0_i32 = arith.constant 0 : i32
    %c0_i32_0 = arith.constant 0 : i32
    %c0_i32_1 = arith.constant 0 : i32
    return %c0_i32, %c0_i32_0 : i32, i32
  }
  func.func @transform_2(%arg0: i32) -> (i32, i32) {
    %c0_i32 = arith.constant 0 : i32
    %c0_i32_0 = arith.constant 0 : i32
    %c0_i32_1 = arith.constant 0 : i32
    return %c0_i32, %c0_i32_0 : i32, i32
  }
  func.func @transform_3(%arg0: i32) -> (i32, i32) {
    %c0_i32 = arith.constant 0 : i32
    %c0_i32_0 = arith.constant 0 : i32
    %c0_i32_1 = arith.constant 0 : i32
    return %c0_i32, %c0_i32_0 : i32, i32
  }
  func.func @transform_4(%arg0: i32) -> (i32, i32) {
    %c0_i32 = arith.constant 0 : i32
    %c0_i32_0 = arith.constant 0 : i32
    return %arg0, %c0_i32 : i32, i32
  }
  func.func @transform_5(%arg0: i32) -> (i32, i32) {
    %c0_i32 = arith.constant 0 : i32
    %c0_i32_0 = arith.constant 0 : i32
    return %arg0, %c0_i32 : i32, i32
  }
}

</mosaic_0001>

<bundles_post_ra>
// kernel: tpu_custom_call.1
= control target key start
LH: loop header
LB: loop body
LE: loop exit
PB: predicated region body
PF: predicated region fallthrough
CT: control target
= control target key end

     0   :  { %10 = vsyncpa [#allocation3], 0  ;;  %s943_s0 = inlined_call_operand.hbm [shape: f32[2,1024], index: 0, kind: input, shape index: {}]   ;;  %s944_s1 = inlined_call_operand.hbm [shape: f32[1024,128], index: 1, kind: input, shape index: {}]   ;;  %s945_s2 = inlined_call_operand.hbm [shape: f32[128,1024], index: 2, kind: input, shape index: {}]   ;;  %s946_s3 = inlined_call_operand.vmem [shape: f32[1,128], index: 3, kind: input, shape index: {}]   ;;  %s947_s4 = inlined_call_operand.vmem [shape: s32[2,1], index: 4, kind: input, shape index: {}]   ;;  %s948_s5 = inlined_call_operand.hbm [shape: f32[2,1024], index: 5, kind: output, shape index: {}]  }
   0x1   :  { %11 = vsyncpa [#allocation6], 0  ;;  %s28_s20 = sshll.u32 %s944_s1, 4  ;;  %s29_s20 = int_to_ptr.hbm [resolvable:$true] %s28_s20 }
   0x2   :  { %12 = vsyncpa [#allocation4], 0  ;;  %s867_s21 = smov [#allocation5]   ;;  %s18_s25 = sshll.u32 %s943_s0, 4  ;;  %s19_s25 = int_to_ptr.hbm [resolvable:$true] %s18_s25 }
   0x3   :  { %s30_s22 = sshll.u32 %s867_s21, 4  ;;  %s868_s26 = smov 128   ;;  %s31_s22 = int_to_ptr.vmem [resolvable:$true] %s30_s22 }
   0x4   :  { %s869_s27 = smov 8   ;;  %s870_s28 = smov [#allocation2]  }
   0x5   :  { %36 = dma.hbm_to_vmem [thread:$0]  %s29_s20, 16384, %s31_s22, [#allocation6], %s868_s26, %s868_s26, %s869_s27  }
   0x6   :  { %s20_s29 = sshll.u32 %s870_s28, 4  ;;  %s41_s7 = sshll.u32 %s945_s2, 4  ;;  %s21_s29 = int_to_ptr.vmem [resolvable:$true] %s20_s29  ;;  %s42_s7 = int_to_ptr.hbm [resolvable:$true] %s41_s7 }
   0x7   :  { %23 = dma.hbm_to_vmem [thread:$0]  %s19_s25, 256, %s21_s29, [#allocation3]  }
   0x8   :  { %s871_s1 = smov [#allocation7]   ;;  %s872_s9 = smov 1024  }
   0x9   :  { %s43_s8 = sshll.u32 %s871_s1, 4  ;;  %s873_s10 = smov 64   ;;  %s44_s8 = int_to_ptr.vmem [resolvable:$true] %s43_s8 }
   0xa   :  { %49 = dma.hbm_to_vmem [thread:$0]  %s42_s7, 16384, %s44_s8, [#allocation6], %s872_s9, %s872_s9, %s873_s10  }
   0xb   :  { %861 = dma.done.wait [#allocation3], 256  }
   0xc   :  { %862 = vsyncadd [#allocation3], 4294967040 }
   0xd   :  { %863 = dma.done.wait [#allocation6], 32768  }
   0xe   :  { %864 = vsyncadd [#allocation6], 4294934528  ;;  %v115_v0 = vld [vmem:[#allocation5 + $0x178] sm:$0xff]  ;;  %v114_v2 = vld [vmem:[#allocation5 + $0x170] sm:$0xff]  ;;  %vm381_vm0 = vcmask 1041408   ;;  %vm719_vm6 = vcmask 1045508  }
   0xf   :  { %v83_v1 = vld [vmem:[#allocation5 + $0x78] sm:$0xff]  ;;  %261 = vmatpush.msra.mxu2 %v115_v0  ;;  %v82_v4 = vld [vmem:[#allocation5 + $0x70] sm:$0xff]  ;;  %v113_v6 = vld [vmem:[#allocation5 + $0x168] sm:$0xff]  ;;  %vm721_vm7 = vcmask 1043456   ;;  %s737_s15 = sshll.u32 %s948_s5, 4  ;;  %s738_s15 = int_to_ptr.hbm [resolvable:$true] %s737_s15 }
  0x10   :  { %221 = vmatpush.msra.mxu0 %v83_v1  ;;  %v131_v3 = vld [vmem:[#allocation5 + $0x1f8] sm:$0xff]  ;;  %v130_v7 = vld [vmem:[#allocation5 + $0x1f0] sm:$0xff]  ;;  %v81_v8 = vld [vmem:[#allocation5 + $0x68] sm:$0xff] }
  0x11   :  { %v99_v5 = vld [vmem:[#allocation5 + $0xf8] sm:$0xff]  ;;  %281 = vmatpush.msra.mxu3 %v131_v3  ;;  %262 = vmatpush.msra.mxu2 %v114_v2  ;;  %v98_v9 = vld [vmem:[#allocation5 + $0xf0] sm:$0xff]  ;;  %v129_v10 = vld [vmem:[#allocation5 + $0x1e8] sm:$0xff] }
  0x12   :  { %241 = vmatpush.msra.mxu1 %v99_v5  ;;  %222 = vmatpush.msra.mxu0 %v82_v4  ;;  %v112_v11 = vld [vmem:[#allocation5 + $0x160] sm:$0xff]  ;;  %v97_v13 = vld [vmem:[#allocation5 + $0xe8] sm:$0xff]  ;;  %v111_v16 = vld [vmem:[#allocation5 + $0x158] sm:$0xff] }
  0x13   :  { %282 = vmatpush.msra.mxu3 %v130_v7  ;;  %v80_v12 = vld [vmem:[#allocation5 + $0x60] sm:$0xff]  ;;  %263 = vmatpush.msra.mxu2 %v113_v6  ;;  %v79_v17 = vld [vmem:[#allocation5 + $0x58] sm:$0xff]  ;;  %v110_v20 = vld [vmem:[#allocation5 + $0x150] sm:$0xff] }
  0x14   :  { %242 = vmatpush.msra.mxu1 %v98_v9  ;;  %223 = vmatpush.msra.mxu0 %v81_v8  ;;  %v128_v14 = vld [vmem:[#allocation5 + $0x1e0] sm:$0xff]  ;;  %v127_v18 = vld [vmem:[#allocation5 + $0x1d8] sm:$0xff]  ;;  %v78_v21 = vld [vmem:[#allocation5 + $0x50] sm:$0xff] }
  0x15   :  { %v96_v15 = vld [vmem:[#allocation5 + $0xe0] sm:$0xff]  ;;  %283 = vmatpush.msra.mxu3 %v129_v10  ;;  %264 = vmatpush.msra.mxu2 %v112_v11  ;;  %v95_v19 = vld [vmem:[#allocation5 + $0xd8] sm:$0xff]  ;;  %v126_v22 = vld [vmem:[#allocation5 + $0x1d0] sm:$0xff] }
  0x16   :  { %243 = vmatpush.msra.mxu1 %v97_v13  ;;  %224 = vmatpush.msra.mxu0 %v80_v12  ;;  %v94_v23 = vld [vmem:[#allocation5 + $0xd0] sm:$0xff]  ;;  %v109_v24 = vld [vmem:[#allocation5 + $0x148] sm:$0xff]  ;;  %v108_v28 = vld [vmem:[#allocation5 + $0x140] sm:$0xff] }
  0x17   :  { %284 = vmatpush.msra.mxu3 %v128_v14  ;;  %265 = vmatpush.msra.mxu2 %v111_v16  ;;  %v77_v25 = vld [vmem:[#allocation5 + $0x48] sm:$0xff]  ;;  %v76_v29 = vld [vmem:[#allocation5 + $0x40] sm:$0xff]  ;;  %v107_v32 = vld [vmem:[#allocation5 + $0x138] sm:$0xff] }
  0x18   :  { %244 = vmatpush.msra.mxu1 %v96_v15  ;;  %225 = vmatpush.msra.mxu0 %v79_v17  ;;  %v125_v26 = vld [vmem:[#allocation5 + $0x1c8] sm:$0xff]  ;;  %v124_v30 = vld [vmem:[#allocation5 + $0x1c0] sm:$0xff]  ;;  %v75_v33 = vld [vmem:[#allocation5 + $0x38] sm:$0xff] }
  0x19   :  { %285 = vmatpush.msra.mxu3 %v127_v18  ;;  %266 = vmatpush.msra.mxu2 %v110_v20  ;;  %v93_v27 = vld [vmem:[#allocation5 + $0xc8] sm:$0xff]  ;;  %v92_v31 = vld [vmem:[#allocation5 + $0xc0] sm:$0xff]  ;;  %v123_v34 = vld [vmem:[#allocation5 + $0x1b8] sm:$0xff] }
  0x1a   :  { %245 = vmatpush.msra.mxu1 %v95_v19  ;;  %226 = vmatpush.msra.mxu0 %v78_v21  ;;  %v91_v35 = vld [vmem:[#allocation5 + $0xb8] sm:$0xff]  ;;  %v106_v36 = vld [vmem:[#allocation5 + $0x130] sm:$0xff]  ;;  %v105_v40 = vld [vmem:[#allocation5 + $0x128] sm:$0xff] }
  0x1b   :  { %286 = vmatpush.msra.mxu3 %v126_v22  ;;  %267 = vmatpush.msra.mxu2 %v109_v24  ;;  %v74_v37 = vld [vmem:[#allocation5 + $0x30] sm:$0xff]  ;;  %v73_v41 = vld [vmem:[#allocation5 + $0x28] sm:$0xff]  ;;  %v104_v44 = vld [vmem:[#allocation5 + $0x120] sm:$0xff] }
  0x1c   :  { %246 = vmatpush.msra.mxu1 %v94_v23  ;;  %227 = vmatpush.msra.mxu0 %v77_v25  ;;  %v122_v38 = vld [vmem:[#allocation5 + $0x1b0] sm:$0xff]  ;;  %v121_v42 = vld [vmem:[#allocation5 + $0x1a8] sm:$0xff]  ;;  %v72_v45 = vld [vmem:[#allocation5 + $0x20] sm:$0xff] }
  0x1d   :  { %287 = vmatpush.msra.mxu3 %v125_v26  ;;  %268 = vmatpush.msra.mxu2 %v108_v28  ;;  %v90_v39 = vld [vmem:[#allocation5 + $0xb0] sm:$0xff]  ;;  %v89_v43 = vld [vmem:[#allocation5 + $0xa8] sm:$0xff]  ;;  %v120_v46 = vld [vmem:[#allocation5 + $0x1a0] sm:$0xff] }
  0x1e   :  { %247 = vmatpush.msra.mxu1 %v93_v27  ;;  %228 = vmatpush.msra.mxu0 %v76_v29  ;;  %v88_v47 = vld [vmem:[#allocation5 + $0xa0] sm:$0xff]  ;;  %v103_v48 = vld [vmem:[#allocation5 + $0x118] sm:$0xff]  ;;  %v102_v52 = vld [vmem:[#allocation5 + $0x110] sm:$0xff] }
  0x1f   :  { %288 = vmatpush.msra.mxu3 %v124_v30  ;;  %269 = vmatpush.msra.mxu2 %v107_v32  ;;  %v71_v49 = vld [vmem:[#allocation5 + $0x18] sm:$0xff]  ;;  %v70_v53 = vld [vmem:[#allocation5 + $0x10] sm:$0xff]  ;;  %v101_v56 = vld [vmem:[#allocation5 + $0x108] sm:$0xff] }
  0x20   :  { %248 = vmatpush.msra.mxu1 %v92_v31  ;;  %229 = vmatpush.msra.mxu0 %v75_v33  ;;  %v119_v50 = vld [vmem:[#allocation5 + $0x198] sm:$0xff]  ;;  %v118_v54 = vld [vmem:[#allocation5 + $0x190] sm:$0xff]  ;;  %v69_v57 = vld [vmem:[#allocation5 + $0x8] sm:$0xff] }
  0x21   :  { %289 = vmatpush.msra.mxu3 %v123_v34  ;;  %270 = vmatpush.msra.mxu2 %v106_v36  ;;  %v87_v51 = vld [vmem:[#allocation5 + $0x98] sm:$0xff]  ;;  %v86_v55 = vld [vmem:[#allocation5 + $0x90] sm:$0xff]  ;;  %v117_v58 = vld [vmem:[#allocation5 + $0x188] sm:$0xff] }
  0x22   :  { %249 = vmatpush.msra.mxu1 %v91_v35  ;;  %230 = vmatpush.msra.mxu0 %v74_v37  ;;  %v85_v59 = vld [vmem:[#allocation5 + $0x88] sm:$0xff]  ;;  %v100_v60 = vld [vmem:[#allocation5 + $0x100] sm:$0xff]  ;;  %v179_v62 = vld [vmem:[#allocation5 + $0x378] sm:$0xff] }
  0x23   :  { %290 = vmatpush.msra.mxu3 %v122_v38  ;;  %271 = vmatpush.msra.mxu2 %v105_v40  ;;  %v68_v61 = vld [vmem:[#allocation5] sm:$0xff]  ;;  %v147_v0 = vld [vmem:[#allocation5 + $0x278] sm:$0xff]  ;;  %v178_v2 = vld [vmem:[#allocation5 + $0x370] sm:$0xff] }
  0x24   :  { %250 = vmatpush.msra.mxu1 %v90_v39  ;;  %231 = vmatpush.msra.mxu0 %v73_v41  ;;  %v116_v63 = vld [vmem:[#allocation5 + $0x180] sm:$0xff]  ;;  %v195_v1 = vld [vmem:[#allocation5 + $0x3f8] sm:$0xff]  ;;  %v146_v4 = vld [vmem:[#allocation5 + $0x270] sm:$0xff] }
  0x25   :  { %291 = vmatpush.msra.mxu3 %v121_v42  ;;  %272 = vmatpush.msra.mxu2 %v104_v44  ;;  %v84_v3 = vld [vmem:[#allocation5 + $0x80] sm:$0xff]  ;;  %v163_v5 = vld [vmem:[#allocation5 + $0x2f8] sm:$0xff]  ;;  %v177_v6 = vld [vmem:[#allocation5 + $0x368] sm:$0xff] }
  0x26   :  { %251 = vmatpush.msra.mxu1 %v89_v43  ;;  %232 = vmatpush.msra.mxu0 %v72_v45  ;;  %v194_v7 = vld [vmem:[#allocation5 + $0x3f0] sm:$0xff]  ;;  %v145_v8 = vld [vmem:[#allocation5 + $0x268] sm:$0xff]  ;;  %v176_v10 = vld [vmem:[#allocation5 + $0x360] sm:$0xff] }
  0x27   :  { %292 = vmatpush.msra.mxu3 %v120_v46  ;;  %273 = vmatpush.msra.mxu2 %v103_v48  ;;  %v162_v9 = vld [vmem:[#allocation5 + $0x2f0] sm:$0xff]  ;;  %v193_v11 = vld [vmem:[#allocation5 + $0x3e8] sm:$0xff]  ;;  %v144_v12 = vld [vmem:[#allocation5 + $0x260] sm:$0xff] }
  0x28   :  { %252 = vmatpush.msra.mxu1 %v88_v47  ;;  %233 = vmatpush.msra.mxu0 %v71_v49  ;;  %v161_v13 = vld [vmem:[#allocation5 + $0x2e8] sm:$0xff]  ;;  %v66_v14 = vld [vmem:[#allocation2] sm:$0xff]  ;;  %v175_v15 = vld [vmem:[#allocation5 + $0x358] sm:$0xff] }
  0x29   :  { %293 = vmatpush.msra.mxu3 %v119_v50  ;;  %274 = vmatpush.msra.mxu2 %v102_v52  ;;  %v192_v16 = vld [vmem:[#allocation5 + $0x3e0] sm:$0xff]  ;;  %202 = vst [vmem:[#allocation1] ss:$4 sm:$0xff] %v66_v14  ;;  %v143_v17 = vld [vmem:[#allocation5 + $0x258] sm:$0xff]  ;;  %v174_v19 = vld [vmem:[#allocation5 + $0x350] sm:$0xff] }
  0x2a   :  { %253 = vmatpush.msra.mxu1 %v87_v51  ;;  %234 = vmatpush.msra.mxu0 %v70_v53  ;;  %v160_v18 = vld [vmem:[#allocation5 + $0x2e0] sm:$0xff]  ;;  %v191_v20 = vld [vmem:[#allocation5 + $0x3d8] sm:$0xff]  ;;  %v142_v21 = vld [vmem:[#allocation5 + $0x250] sm:$0xff] }
  0x2b   :  { %294 = vmatpush.msra.mxu3 %v118_v54  ;;  %275 = vmatpush.msra.mxu2 %v101_v56  ;;  %v159_v22 = vld [vmem:[#allocation5 + $0x2d8] sm:$0xff]  ;;  %v173_v23 = vld [vmem:[#allocation5 + $0x348] sm:$0xff]  ;;  %v190_v24 = vld [vmem:[#allocation5 + $0x3d0] sm:$0xff] }
  0x2c   :  { %254 = vmatpush.msra.mxu1 %v86_v55  ;;  %235 = vmatpush.msra.mxu0 %v69_v57  ;;  %v67_v25 = vld [vmem:[#allocation2 + $0x8] sm:$0xff]  ;;  %v141_v26 = vld [vmem:[#allocation5 + $0x248] sm:$0xff]  ;;  %v158_v27 = vld [vmem:[#allocation5 + $0x2d0] sm:$0xff] }
  0x2d   :  { %295 = vmatpush.msra.mxu3 %v117_v58  ;;  %276 = vmatpush.msra.mxu2 %v100_v60  ;;  %204 = vst [vmem:[#allocation1 + $0x20] ss:$4 sm:$0xff] %v67_v25  ;;  %v172_v28 = vld [vmem:[#allocation5 + $0x340] sm:$0xff]  ;;  %v189_v29 = vld [vmem:[#allocation5 + $0x3c8] sm:$0xff]  ;;  %v171_v32 = vld [vmem:[#allocation5 + $0x338] sm:$0xff] }
  0x2e   :  { %255 = vmatpush.msra.mxu1 %v85_v59  ;;  %236 = vmatpush.msra.mxu0 %v68_v61  ;;  %v140_v30 = vld [vmem:[#allocation5 + $0x240] sm:$0xff]  ;;  %v157_v31 = vld [vmem:[#allocation5 + $0x2c8] sm:$0xff]  ;;  %v139_v34 = vld [vmem:[#allocation5 + $0x238] sm:$0xff] }
  0x2f   :  { %341 = vmatpush.msrb.mxu2 %v179_v62  ;;  %296 = vmatpush.msra.mxu3 %v116_v63  ;;  %v188_v33 = vld [vmem:[#allocation5 + $0x3c0] sm:$0xff]  ;;  %v170_v36 = vld [vmem:[#allocation5 + $0x330] sm:$0xff]  ;;  %v187_v37 = vld [vmem:[#allocation5 + $0x3b8] sm:$0xff] }
  0x30   :  { %301 = vmatpush.msrb.mxu0 %v147_v0  ;;  %256 = vmatpush.msra.mxu1 %v84_v3  ;;  %v156_v35 = vld [vmem:[#allocation5 + $0x2c0] sm:$0xff]  ;;  %v138_v38 = vld [vmem:[#allocation5 + $0x230] sm:$0xff]  ;;  %v155_v39 = vld [vmem:[#allocation5 + $0x2b8] sm:$0xff] }
  0x31   :  { %361 = vmatpush.msrb.mxu3 %v195_v1  ;;  %342 = vmatpush.msrb.mxu2 %v178_v2  ;;  %v169_v40 = vld [vmem:[#allocation5 + $0x328] sm:$0xff]  ;;  %v186_v41 = vld [vmem:[#allocation5 + $0x3b0] sm:$0xff]  ;;  %v168_v44 = vld [vmem:[#allocation5 + $0x320] sm:$0xff] }
  0x32   :  { %302 = vmatpush.msrb.mxu0 %v146_v4  ;;  %321 = vmatpush.msrb.mxu1 %v163_v5  ;;  %v137_v42 = vld [vmem:[#allocation5 + $0x228] sm:$0xff]  ;;  %v154_v43 = vld [vmem:[#allocation5 + $0x2b0] sm:$0xff]  ;;  %v207_v46 = vld.sshfl [vmem:[#allocation1 + $0x10] sm:$0xff pattern:$0x73625140] }
  0x33   :  { %343 = vmatpush.msrb.mxu2 %v177_v6  ;;  %362 = vmatpush.msrb.mxu3 %v194_v7  ;;  %v185_v45 = vld [vmem:[#allocation5 + $0x3a8] sm:$0xff]  ;;  %v136_v47 = vld [vmem:[#allocation5 + $0x220] sm:$0xff]  ;;  %v167_v49 = vld [vmem:[#allocation5 + $0x318] sm:$0xff] }
  0x34   :  { %303 = vmatpush.msrb.mxu0 %v145_v8  ;;  %322 = vmatpush.msrb.mxu1 %v162_v9  ;;  %v153_v48 = vld [vmem:[#allocation5 + $0x2a8] sm:$0xff]  ;;  %v184_v50 = vld [vmem:[#allocation5 + $0x3a0] sm:$0xff]  ;;  %v135_v53 = vld [vmem:[#allocation5 + $0x218] sm:$0xff] }
  0x35   :  { %344 = vmatpush.msrb.mxu2 %v176_v10  ;;  %363 = vmatpush.msrb.mxu3 %v193_v11  ;;  %v205_v51 = vld.sshfl [vmem:[#allocation1] sm:$0xff pattern:$0x73625140]  ;;  %v208_v52 = vld.sshfl [vmem:[#allocation1 + $0x18] sm:$0xff pattern:$0x73625140] }
  0x36   :  { %304 = vmatpush.msrb.mxu0 %v144_v12  ;;  %323 = vmatpush.msrb.mxu1 %v161_v13  ;;  %v152_v54 = vld [vmem:[#allocation5 + $0x2a0] sm:$0xff]  ;;  %v166_v55 = vld [vmem:[#allocation5 + $0x310] sm:$0xff]  ;;  %v183_v56 = vld [vmem:[#allocation5 + $0x398] sm:$0xff] }
  0x37   :  { %345 = vmatpush.msrb.mxu2 %v175_v15  ;;  %364 = vmatpush.msrb.mxu3 %v192_v16  ;;  %v206_v57 = vld.sshfl [vmem:[#allocation1 + $0x8] sm:$0xff pattern:$0x73625140]  ;;  %v151_v59 = vld [vmem:[#allocation5 + $0x298] sm:$0xff]  ;;  %v165_v60 = vld [vmem:[#allocation5 + $0x308] sm:$0xff] }
  0x38   :  { %305 = vmatpush.msrb.mxu0 %v143_v17  ;;  %324 = vmatpush.msrb.mxu1 %v160_v18  ;;  %v134_v58 = vld [vmem:[#allocation5 + $0x210] sm:$0xff]  ;;  %v133_v62 = vld [vmem:[#allocation5 + $0x208] sm:$0xff]  ;;  %v164_v0 = vld [vmem:[#allocation5 + $0x300] sm:$0xff] }
  0x39   :  { %346 = vmatpush.msrb.mxu2 %v174_v19  ;;  %365 = vmatpush.msrb.mxu3 %v191_v20  ;;  %v182_v61 = vld [vmem:[#allocation5 + $0x390] sm:$0xff]  ;;  %v181_v1 = vld [vmem:[#allocation5 + $0x388] sm:$0xff]  ;;  %v211_v2 = vld.sshfl [vmem:[#allocation1 + $0x30] sm:$0xff pattern:$0x73625140] }
  0x3a   :  { %306 = vmatpush.msrb.mxu0 %v142_v21  ;;  %325 = vmatpush.msrb.mxu1 %v159_v22  ;;  %v150_v63 = vld [vmem:[#allocation5 + $0x290] sm:$0xff]  ;;  %v132_v3 = vld [vmem:[#allocation5 + $0x200] sm:$0xff]  ;;  %v149_v4 = vld [vmem:[#allocation5 + $0x288] sm:$0xff] }
  0x3b   :  { %347 = vmatpush.msrb.mxu2 %v173_v23  ;;  %366 = vmatpush.msrb.mxu3 %v190_v24  ;;  %v180_v5 = vld [vmem:[#allocation5 + $0x380] sm:$0xff]  ;;  %v209_v6 = vld.sshfl [vmem:[#allocation1 + $0x20] sm:$0xff pattern:$0x73625140] }
  0x3c   :  { %307 = vmatpush.msrb.mxu0 %v141_v26  ;;  %326 = vmatpush.msrb.mxu1 %v158_v27  ;;  %v212_v7 = vld.sshfl [vmem:[#allocation1 + $0x38] sm:$0xff pattern:$0x73625140]  ;;  %v210_v9 = vld.sshfl [vmem:[#allocation1 + $0x28] sm:$0xff pattern:$0x73625140] }
  0x3d   :  { %348 = vmatpush.msrb.mxu2 %v172_v28  ;;  %367 = vmatpush.msrb.mxu3 %v189_v29  ;;  %v148_v8 = vld [vmem:[#allocation5 + $0x280] sm:$0xff]  ;;  %v760_v10 = vld [vmem:[%s946_s3] ss:$0 sm:$0xff] }
  0x3e   :  { %308 = vmatpush.msrb.mxu0 %v140_v30  ;;  %327 = vmatpush.msrb.mxu1 %v157_v31  ;;  %v407_v28 = vld [vmem:[%s947_s4] sm:$0x3]  ;;  %v536_v29 = vld [vmem:[#allocation7 + $0x3c0] sm:$0xff]  ;;  %v874_v31 = vmov 0   ;;  %s876_s4 = smov [#allocation8]  }
  0x3f   :  { %349 = vmatpush.msrb.mxu2 %v171_v32  ;;  %368 = vmatpush.msrb.mxu3 %v188_v33  ;;  %v537_v30 = vld [vmem:[#allocation7 + $0x3c8] sm:$0xff]  ;;  %v538_v32 = vld [vmem:[#allocation7 + $0x3d0] sm:$0xff]  ;;  %v539_v33 = vld [vmem:[#allocation7 + $0x3d8] sm:$0xff]  ;;  %s735_s12 = sshll.u32 %s876_s4, 4  ;;  %s736_s12 = int_to_ptr.vmem [resolvable:$true] %s735_s12 }
  0x40   :  { %309 = vmatpush.msrb.mxu0 %v139_v34  ;;  %328 = vmatpush.msrb.mxu1 %v156_v35  ;;  %v528_v34 = vld [vmem:[#allocation7 + $0x380] sm:$0xff]  ;;  %v529_v35 = vld [vmem:[#allocation7 + $0x388] sm:$0xff] }
  0x41   :  { %350 = vmatpush.msrb.mxu2 %v170_v36  ;;  %369 = vmatpush.msrb.mxu3 %v187_v37  ;;  %v530_v36 = vld [vmem:[#allocation7 + $0x390] sm:$0xff]  ;;  %v531_v37 = vld [vmem:[#allocation7 + $0x398] sm:$0xff] }
  0x42   :  { %310 = vmatpush.msrb.mxu0 %v138_v38  ;;  %329 = vmatpush.msrb.mxu1 %v155_v39  ;;  %v520_v38 = vld [vmem:[#allocation7 + $0x340] sm:$0xff]  ;;  %v521_v39 = vld [vmem:[#allocation7 + $0x348] sm:$0xff] }
  0x43   :  { %351 = vmatpush.msrb.mxu2 %v169_v40  ;;  %370 = vmatpush.msrb.mxu3 %v186_v41  ;;  %v522_v40 = vld [vmem:[#allocation7 + $0x350] sm:$0xff]  ;;  %v523_v41 = vld [vmem:[#allocation7 + $0x358] sm:$0xff] }
  0x44   :  { %311 = vmatpush.msrb.mxu0 %v137_v42  ;;  %330 = vmatpush.msrb.mxu1 %v154_v43  ;;  %v512_v42 = vld [vmem:[#allocation7 + $0x300] sm:$0xff]  ;;  %v513_v43 = vld [vmem:[#allocation7 + $0x308] sm:$0xff] }
  0x45   :  { %352 = vmatpush.msrb.mxu2 %v168_v44  ;;  %371 = vmatpush.msrb.mxu3 %v185_v45  ;;  %v514_v44 = vld [vmem:[#allocation7 + $0x310] sm:$0xff]  ;;  %v515_v45 = vld [vmem:[#allocation7 + $0x318] sm:$0xff] }
  0x46   :  { %277 = vmatmul.f32.vlgmr.msra.gmra.mxu2 %v207_v46  ;;  %312 = vmatpush.msrb.mxu0 %v136_v47  ;;  %v504_v46 = vld [vmem:[#allocation7 + $0x2c0] sm:$0xff]  ;;  %v505_v47 = vld [vmem:[#allocation7 + $0x2c8] sm:$0xff] }
  0x47   :  { %331 = vmatpush.msrb.mxu1 %v153_v48  ;;  %353 = vmatpush.msrb.mxu2 %v167_v49  ;;  %v506_v48 = vld [vmem:[#allocation7 + $0x2d0] sm:$0xff]  ;;  %v507_v49 = vld [vmem:[#allocation7 + $0x2d8] sm:$0xff] }
  0x48   :  { %372 = vmatpush.msrb.mxu3 %v184_v50  ;;  %237 = vmatmul.f32.vlgmr.msra.gmra.mxu0 %v205_v51  ;;  %v496_v50 = vld [vmem:[#allocation7 + $0x280] sm:$0xff]  ;;  %v497_v51 = vld [vmem:[#allocation7 + $0x288] sm:$0xff] }
  0x49   :  { %297 = vmatmul.f32.vlgmr.msra.gmra.mxu3 %v208_v52  ;;  %313 = vmatpush.msrb.mxu0 %v135_v53  ;;  %v498_v52 = vld [vmem:[#allocation7 + $0x290] sm:$0xff]  ;;  %v499_v53 = vld [vmem:[#allocation7 + $0x298] sm:$0xff] }
  0x4a   :  { %332 = vmatpush.msrb.mxu1 %v152_v54  ;;  %354 = vmatpush.msrb.mxu2 %v166_v55  ;;  %v488_v54 = vld [vmem:[#allocation7 + $0x240] sm:$0xff]  ;;  %v489_v55 = vld [vmem:[#allocation7 + $0x248] sm:$0xff] }
  0x4b   :  { %373 = vmatpush.msrb.mxu3 %v183_v56  ;;  %257 = vmatmul.f32.vlgmr.msra.gmra.mxu1 %v206_v57  ;;  %v490_v56 = vld [vmem:[#allocation7 + $0x250] sm:$0xff]  ;;  %v491_v57 = vld [vmem:[#allocation7 + $0x258] sm:$0xff] }
  0x4c   :  { %314 = vmatpush.msrb.mxu0 %v134_v58  ;;  %333 = vmatpush.msrb.mxu1 %v151_v59  ;;  %v480_v58 = vld [vmem:[#allocation7 + $0x200] sm:$0xff]  ;;  %v481_v59 = vld [vmem:[#allocation7 + $0x208] sm:$0xff] }
  0x4d   :  { %355 = vmatpush.msrb.mxu2 %v165_v60  ;;  %374 = vmatpush.msrb.mxu3 %v182_v61  ;;  %v482_v60 = vld [vmem:[#allocation7 + $0x210] sm:$0xff]  ;;  %v483_v61 = vld [vmem:[#allocation7 + $0x218] sm:$0xff] }
  0x4e   :  { %315 = vmatpush.msrb.mxu0 %v133_v62  ;;  %334 = vmatpush.msrb.mxu1 %v150_v63  ;;  %v472_v62 = vld [vmem:[#allocation7 + $0x1c0] sm:$0xff]  ;;  %v473_v63 = vld [vmem:[#allocation7 + $0x1c8] sm:$0xff] }
  0x4f   :  { %356 = vmatpush.msrb.mxu2 %v164_v0  ;;  %375 = vmatpush.msrb.mxu3 %v181_v1  ;;  %v474_v0 = vld [vmem:[#allocation7 + $0x1d0] sm:$0xff]  ;;  %v475_v1 = vld [vmem:[#allocation7 + $0x1d8] sm:$0xff] }
  0x50   :  { %357 = vmatmul.f32.vlgmr.msrb.gmra.mxu2 %v211_v2  ;;  %316 = vmatpush.msrb.mxu0 %v132_v3  ;;  %v464_v2 = vld [vmem:[#allocation7 + $0x180] sm:$0xff]  ;;  %v465_v3 = vld [vmem:[#allocation7 + $0x188] sm:$0xff] }
  0x51   :  { %335 = vmatpush.msrb.mxu1 %v149_v4  ;;  %376 = vmatpush.msrb.mxu3 %v180_v5  ;;  %v466_v4 = vld [vmem:[#allocation7 + $0x190] sm:$0xff]  ;;  %v467_v5 = vld [vmem:[#allocation7 + $0x198] sm:$0xff] }
  0x52   :  { %317 = vmatmul.f32.vlgmr.msrb.gmra.mxu0 %v209_v6  ;;  %377 = vmatmul.f32.vlgmr.msrb.gmra.mxu3 %v212_v7  ;;  %v456_v7 = vld [vmem:[#allocation7 + $0x140] sm:$0xff] }
  0x53   :  { %336 = vmatpush.msrb.mxu1 %v148_v8  ;;  %758 = vset.pattern.permute.xlu1 %v874_v31  ;;  %v457_v8 = vld [vmem:[#allocation7 + $0x148] sm:$0xff] }
  0x54   :  { %337 = vmatmul.f32.vlgmr.msrb.gmra.mxu1 %v210_v9  ;;  %544 = vmatpush.msra.mxu0 %v536_v29  ;;  %v416_v29 = vld [vmem:[#allocation7] sm:$0xff] }
  0x55   :  { %409 = vperm.xlu1 %758, %v407_v28   ;;  %564 = vmatpush.msra.mxu1 %v537_v30  ;;  %v427_v28 = vld [vmem:[#allocation7 + $0x58] sm:$0xff] }
  0x56   :  { %584 = vmatpush.msra.mxu2 %v538_v32  ;;  %604 = vmatpush.msra.mxu3 %v539_v33  ;;  %v417_v32 = vld [vmem:[#allocation7 + $0x8] sm:$0xff]  ;;  %v418_v33 = vld [vmem:[#allocation7 + $0x10] sm:$0xff] }
  0x57   :  { %545 = vmatpush.msra.mxu0 %v528_v34  ;;  %565 = vmatpush.msra.mxu1 %v529_v35  ;;  %v419_v35 = vld [vmem:[#allocation7 + $0x18] sm:$0xff] }
  0x58   :  { %585 = vmatpush.msra.mxu2 %v530_v36  ;;  %605 = vmatpush.msra.mxu3 %v531_v37  ;;  %v540_v36 = vld [vmem:[#allocation7 + $0x3e0] sm:$0xff]  ;;  %v541_v37 = vld [vmem:[#allocation7 + $0x3e8] sm:$0xff] }
  0x59   :  { %546 = vmatpush.msra.mxu0 %v520_v38  ;;  %566 = vmatpush.msra.mxu1 %v521_v39  ;;  %v542_v38 = vld [vmem:[#allocation7 + $0x3f0] sm:$0xff]  ;;  %v543_v39 = vld [vmem:[#allocation7 + $0x3f8] sm:$0xff] }
  0x5a   :  { %586 = vmatpush.msra.mxu2 %v522_v40  ;;  %606 = vmatpush.msra.mxu3 %v523_v41  ;;  %v532_v40 = vld [vmem:[#allocation7 + $0x3a0] sm:$0xff]  ;;  %v533_v41 = vld [vmem:[#allocation7 + $0x3a8] sm:$0xff] }
  0x5b   :  { %547 = vmatpush.msra.mxu0 %v512_v42  ;;  %567 = vmatpush.msra.mxu1 %v513_v43  ;;  %v534_v42 = vld [vmem:[#allocation7 + $0x3b0] sm:$0xff]  ;;  %v535_v43 = vld [vmem:[#allocation7 + $0x3b8] sm:$0xff] }
  0x5c   :  { %587 = vmatpush.msra.mxu2 %v514_v44  ;;  %607 = vmatpush.msra.mxu3 %v515_v45  ;;  %v524_v44 = vld [vmem:[#allocation7 + $0x360] sm:$0xff]  ;;  %v525_v45 = vld [vmem:[#allocation7 + $0x368] sm:$0xff] }
  0x5d   :  { %548 = vmatpush.msra.mxu0 %v504_v46  ;;  %568 = vmatpush.msra.mxu1 %v505_v47  ;;  %v526_v46 = vld [vmem:[#allocation7 + $0x370] sm:$0xff]  ;;  %v516_v47 = vld [vmem:[#allocation7 + $0x320] sm:$0xff] }
  0x5e   :  { %588 = vmatpush.msra.mxu2 %v506_v48  ;;  %608 = vmatpush.msra.mxu3 %v507_v49  ;;  %v517_v48 = vld [vmem:[#allocation7 + $0x328] sm:$0xff]  ;;  %v518_v49 = vld [vmem:[#allocation7 + $0x330] sm:$0xff] }
  0x5f   :  { %549 = vmatpush.msra.mxu0 %v496_v50  ;;  %569 = vmatpush.msra.mxu1 %v497_v51  ;;  %v519_v50 = vld [vmem:[#allocation7 + $0x338] sm:$0xff]  ;;  %v508_v51 = vld [vmem:[#allocation7 + $0x2e0] sm:$0xff] }
  0x60   :  { %589 = vmatpush.msra.mxu2 %v498_v52  ;;  %609 = vmatpush.msra.mxu3 %v499_v53  ;;  %v509_v52 = vld [vmem:[#allocation7 + $0x2e8] sm:$0xff]  ;;  %v510_v53 = vld [vmem:[#allocation7 + $0x2f0] sm:$0xff] }
  0x61   :  { %550 = vmatpush.msra.mxu0 %v488_v54  ;;  %570 = vmatpush.msra.mxu1 %v489_v55  ;;  %v511_v54 = vld [vmem:[#allocation7 + $0x2f8] sm:$0xff]  ;;  %v500_v55 = vld [vmem:[#allocation7 + $0x2a0] sm:$0xff] }
  0x62   :  { %590 = vmatpush.msra.mxu2 %v490_v56  ;;  %610 = vmatpush.msra.mxu3 %v491_v57  ;;  %v501_v56 = vld [vmem:[#allocation7 + $0x2a8] sm:$0xff]  ;;  %v502_v57 = vld [vmem:[#allocation7 + $0x2b0] sm:$0xff] }
  0x63   :  { %551 = vmatpush.msra.mxu0 %v480_v58  ;;  %571 = vmatpush.msra.mxu1 %v481_v59  ;;  %v503_v58 = vld [vmem:[#allocation7 + $0x2b8] sm:$0xff]  ;;  %v492_v59 = vld [vmem:[#allocation7 + $0x260] sm:$0xff] }
  0x64   :  { %591 = vmatpush.msra.mxu2 %v482_v60  ;;  %611 = vmatpush.msra.mxu3 %v483_v61  ;;  %v493_v60 = vld [vmem:[#allocation7 + $0x268] sm:$0xff]  ;;  %v494_v61 = vld [vmem:[#allocation7 + $0x270] sm:$0xff] }
  0x65   :  { %552 = vmatpush.msra.mxu0 %v472_v62  ;;  %572 = vmatpush.msra.mxu1 %v473_v63  ;;  %v495_v62 = vld [vmem:[#allocation7 + $0x278] sm:$0xff]  ;;  %v484_v63 = vld [vmem:[#allocation7 + $0x220] sm:$0xff] }
  0x66   :  { %592 = vmatpush.msra.mxu2 %v474_v0  ;;  %612 = vmatpush.msra.mxu3 %v475_v1  ;;  %v485_v0 = vld [vmem:[#allocation7 + $0x228] sm:$0xff]  ;;  %v486_v1 = vld [vmem:[#allocation7 + $0x230] sm:$0xff] }
  0x67   :  { %553 = vmatpush.msra.mxu0 %v464_v2  ;;  %573 = vmatpush.msra.mxu1 %v465_v3  ;;  %v487_v2 = vld [vmem:[#allocation7 + $0x238] sm:$0xff]  ;;  %v476_v3 = vld [vmem:[#allocation7 + $0x1e0] sm:$0xff] }
  0x68   :  { %593 = vmatpush.msra.mxu2 %v466_v4  ;;  %613 = vmatpush.msra.mxu3 %v467_v5  ;;  %v477_v4 = vld [vmem:[#allocation7 + $0x1e8] sm:$0xff]  ;;  %v478_v5 = vld [vmem:[#allocation7 + $0x1f0] sm:$0xff] }
  0x69   :  { %554 = vmatpush.msra.mxu0 %v456_v7  ;;  %574 = vmatpush.msra.mxu1 %v457_v8  ;;  %v468_v7 = vld [vmem:[#allocation7 + $0x1a0] sm:$0xff]  ;;  %v469_v8 = vld [vmem:[#allocation7 + $0x1a8] sm:$0xff] }
  0x6a   :  { %759 = vset.pattern.permute.xlu0 %v874_v31  ;;  %v527_v31 = vld [vmem:[#allocation7 + $0x378] sm:$0xff] }
  0xc5   :  { %v238_v11 = vpop.f32.mrf.mxu0 }
  0xc6   :  { %v239_v12 = vadd.f32 %v760_v10, %v238_v11  ;;  %v458_v10 = vld [vmem:[#allocation7 + $0x150] sm:$0xff]  ;;  %v459_v11 = vld [vmem:[#allocation7 + $0x158] sm:$0xff] }
  0xc7   :  { %594 = vmatpush.msra.mxu2 %v458_v10  ;;  %614 = vmatpush.msra.mxu3 %v459_v11  ;;  %v471_v10 = vld [vmem:[#allocation7 + $0x1b8] sm:$0xff]  ;;  %v460_v11 = vld [vmem:[#allocation7 + $0x160] sm:$0xff] }
  0xc8   :  { %v258_v13 = vpop.f32.mrf.mxu1 }
  0xc9   :  { %v259_v14 = vadd.f32 %v258_v13, %v239_v12  ;;  %v278_v15 = vpop.f32.mrf.mxu2  ;;  %v448_v12 = vld [vmem:[#allocation7 + $0x100] sm:$0xff]  ;;  %v449_v13 = vld [vmem:[#allocation7 + $0x108] sm:$0xff] }
  0xca   :  { %555 = vmatpush.msra.mxu0 %v448_v12  ;;  %575 = vmatpush.msra.mxu1 %v449_v13  ;;  %v461_v12 = vld [vmem:[#allocation7 + $0x168] sm:$0xff]  ;;  %v462_v13 = vld [vmem:[#allocation7 + $0x170] sm:$0xff] }
  0xcb   :  { %v279_v16 = vadd.f32 %v278_v15, %v259_v14  ;;  %v450_v15 = vld [vmem:[#allocation7 + $0x110] sm:$0xff] }
  0xcc   :  { %v298_v17 = vpop.f32.mrf.mxu3  ;;  %595 = vmatpush.msra.mxu2 %v450_v15  ;;  %v452_v15 = vld [vmem:[#allocation7 + $0x120] sm:$0xff] }
  0xcd   :  { %v299_v18 = vadd.f32 %v298_v17, %v279_v16  ;;  %v451_v16 = vld [vmem:[#allocation7 + $0x118] sm:$0xff]  ;;  %v440_v17 = vld [vmem:[#allocation7 + $0xc0] sm:$0xff] }
  0xce   :  { %615 = vmatpush.msra.mxu3 %v451_v16  ;;  %556 = vmatpush.msra.mxu0 %v440_v17  ;;  %v453_v16 = vld [vmem:[#allocation7 + $0x128] sm:$0xff]  ;;  %v454_v17 = vld [vmem:[#allocation7 + $0x130] sm:$0xff] }
  0xcf   :  { %v318_v19 = vpop.f32.mrf.mxu0 }
  0xd0   :  { %v319_v20 = vadd.f32 %v318_v19, %v299_v18  ;;  %v441_v18 = vld [vmem:[#allocation7 + $0xc8] sm:$0xff]  ;;  %v442_v19 = vld [vmem:[#allocation7 + $0xd0] sm:$0xff] }
  0xd1   :  { %v338_v21 = vpop.f32.mrf.mxu1  ;;  %576 = vmatpush.msra.mxu1 %v441_v18  ;;  %596 = vmatpush.msra.mxu2 %v442_v19  ;;  %v455_v18 = vld [vmem:[#allocation7 + $0x138] sm:$0xff]  ;;  %v444_v19 = vld [vmem:[#allocation7 + $0xe0] sm:$0xff] }
  0xd2   :  { %v339_v22 = vadd.f32 %v338_v21, %v319_v20  ;;  %v443_v20 = vld [vmem:[#allocation7 + $0xd8] sm:$0xff]  ;;  %v432_v21 = vld [vmem:[#allocation7 + $0x80] sm:$0xff] }
  0xd3   :  { %v358_v23 = vpop.f32.mrf.mxu2  ;;  %616 = vmatpush.msra.mxu3 %v443_v20  ;;  %557 = vmatpush.msra.mxu0 %v432_v21  ;;  %v445_v20 = vld [vmem:[#allocation7 + $0xe8] sm:$0xff]  ;;  %v446_v21 = vld [vmem:[#allocation7 + $0xf0] sm:$0xff] }
  0xd4   :  { %v359_v24 = vadd.f32 %v358_v23, %v339_v22  ;;  %v433_v22 = vld [vmem:[#allocation7 + $0x88] sm:$0xff]  ;;  %v434_v23 = vld [vmem:[#allocation7 + $0x90] sm:$0xff] }
  0xd5   :  { %v378_v25 = vpop.f32.mrf.mxu3  ;;  %577 = vmatpush.msra.mxu1 %v433_v22  ;;  %597 = vmatpush.msra.mxu2 %v434_v23  ;;  %v447_v22 = vld [vmem:[#allocation7 + $0xf8] sm:$0xff]  ;;  %v436_v23 = vld [vmem:[#allocation7 + $0xa0] sm:$0xff] }
  0xd6   :  { %v919_v26 = vadd.f32 %v378_v25, %v359_v24  ;;  %v435_v24 = vld [vmem:[#allocation7 + $0x98] sm:$0xff]  ;;  %v424_v25 = vld [vmem:[#allocation7 + $0x40] sm:$0xff] }
  0xd7   :  { %617 = vmatpush.msra.mxu3 %v435_v24  ;;  %558 = vmatpush.msra.mxu0 %v424_v25  ;;  %v437_v24 = vld [vmem:[#allocation7 + $0xa8] sm:$0xff]  ;;  %v438_v25 = vld [vmem:[#allocation7 + $0xb0] sm:$0xff] }
  0xd8   :  { %v382_v27 = vsel %vm381_vm0, %v919_v26, -inf }
  0xd9   :  { %383 = vmax.xlane.f32.xlu0 %v382_v27  ;;  %v426_v27 = vld [vmem:[#allocation7 + $0x50] sm:$0xff]  ;;  %618 = vmatpush.msra.mxu3 %v427_v28  ;;  %v429_v28 = vld [vmem:[#allocation7 + $0x68] sm:$0xff] }
  0xda   :  { %598 = vmatpush.msra.mxu2 %v426_v27  ;;  %559 = vmatpush.msra.mxu0 %v416_v29  ;;  %v428_v27 = vld [vmem:[#allocation7 + $0x60] sm:$0xff]  ;;  %v430_v29 = vld [vmem:[#allocation7 + $0x70] sm:$0xff] }
  0xdb   :  { %619 = vmatpush.msra.mxu3 %v419_v35  ;;  %v422_v35 = vld [vmem:[#allocation7 + $0x30] sm:$0xff] }
  0xdc   :  { %599 = vmatpush.msra.mxu2 %v418_v33  ;;  %624 = vmatpush.msrb.mxu0 %v540_v36  ;;  %v420_v33 = vld [vmem:[#allocation7 + $0x20] sm:$0xff]  ;;  %v423_v36 = vld [vmem:[#allocation7 + $0x38] sm:$0xff] }
  0xdd   :  { %684 = vmatpush.msrb.mxu3 %v543_v39 }
  0xde   :  { %664 = vmatpush.msrb.mxu2 %v542_v38  ;;  %625 = vmatpush.msrb.mxu0 %v532_v40  ;;  %v405_v40 = vlaneseq }
  0xdf   :  { %685 = vmatpush.msrb.mxu3 %v535_v43 }
  0xe0   :  { %665 = vmatpush.msrb.mxu2 %v534_v42  ;;  %626 = vmatpush.msrb.mxu0 %v524_v44 }
  0xe1   :  { %686 = vmatpush.msrb.mxu3 %v527_v31 }
  0xe2   :  { %666 = vmatpush.msrb.mxu2 %v526_v46  ;;  %627 = vmatpush.msrb.mxu0 %v516_v47  ;;  %v410_v46 = vpop.permute.xlu1 %409 }
  0xe3   :  { %687 = vmatpush.msrb.mxu3 %v519_v50 }
  0xe4   :  { %667 = vmatpush.msrb.mxu2 %v518_v49  ;;  %628 = vmatpush.msrb.mxu0 %v508_v51  ;;  %v875_v51 = vmov 0.0  }
  0xe5   :  { %688 = vmatpush.msrb.mxu3 %v511_v54 }
  0xe6   :  { %668 = vmatpush.msrb.mxu2 %v510_v53  ;;  %629 = vmatpush.msrb.mxu0 %v500_v55 }
  0xe7   :  { %689 = vmatpush.msrb.mxu3 %v503_v58 }
  0xe8   :  { %669 = vmatpush.msrb.mxu2 %v502_v57  ;;  %630 = vmatpush.msrb.mxu0 %v492_v59 }
  0xe9   :  { %690 = vmatpush.msrb.mxu3 %v495_v62 }
  0xea   :  { %670 = vmatpush.msrb.mxu2 %v494_v61  ;;  %631 = vmatpush.msrb.mxu0 %v484_v63 }
  0xeb   :  { %691 = vmatpush.msrb.mxu3 %v487_v2 }
  0xec   :  { %671 = vmatpush.msrb.mxu2 %v486_v1  ;;  %632 = vmatpush.msrb.mxu0 %v476_v3 }
  0xee   :  { %672 = vmatpush.msrb.mxu2 %v478_v5  ;;  %633 = vmatpush.msrb.mxu0 %v468_v7 }
  0xf0   :  { %634 = vmatpush.msrb.mxu0 %v460_v11 }
  0xf2   :  { %635 = vmatpush.msrb.mxu0 %v452_v15 }
  0xf4   :  { %636 = vmatpush.msrb.mxu0 %v444_v19 }
  0xf6   :  { %637 = vmatpush.msrb.mxu0 %v436_v23 }
  0xf8   :  { %638 = vmatpush.msrb.mxu0 %v428_v27 }
  0xfa   :  { %639 = vmatpush.msrb.mxu0 %v420_v33 }
 0x14c   :  { %v384_v6 = vpop.xlane.xlu0 %383 }
 0x14d   :  { %v385_v9 = vsub.f32 %v919_v26, %v384_v6  ;;  %v425_v26 = vld [vmem:[#allocation7 + $0x48] sm:$0xff]  ;;  %v479_v6 = vld [vmem:[#allocation7 + $0x1f8] sm:$0xff] }
 0x14e   :  { %578 = vmatpush.msra.mxu1 %v425_v26  ;;  %692 = vmatpush.msrb.mxu3 %v479_v6  ;;  %v439_v26 = vld [vmem:[#allocation7 + $0xb8] sm:$0xff] }
 0x14f   :  { %v386_v14 = vmul.f32 1.442695, %v385_v9  ;;  %v470_v9 = vld [vmem:[#allocation7 + $0x1b0] sm:$0xff] }
 0x150   :  { %579 = vmatpush.msra.mxu1 %v417_v32  ;;  %673 = vmatpush.msrb.mxu2 %v470_v9  ;;  %v431_v32 = vld [vmem:[#allocation7 + $0x78] sm:$0xff] }
 0x151   :  { %761 = vpow2.f32 %v386_v14  ;;  %693 = vmatpush.msrb.mxu3 %v471_v10  ;;  %v463_v14 = vld [vmem:[#allocation7 + $0x178] sm:$0xff] }
 0x152   :  { %644 = vmatpush.msrb.mxu1 %v541_v37  ;;  %674 = vmatpush.msrb.mxu2 %v462_v13 }
 0x153   :  { %694 = vmatpush.msrb.mxu3 %v463_v14 }
 0x154   :  { %645 = vmatpush.msrb.mxu1 %v533_v41  ;;  %675 = vmatpush.msrb.mxu2 %v454_v17 }
 0x155   :  { %695 = vmatpush.msrb.mxu3 %v455_v18 }
 0x156   :  { %646 = vmatpush.msrb.mxu1 %v525_v45  ;;  %676 = vmatpush.msrb.mxu2 %v446_v21  ;;  %v406_v45 = vand.u32 127, %v405_v40 }
 0x157   :  { %v928_v30 = vpop.eup %761  ;;  %696 = vmatpush.msrb.mxu3 %v447_v22 }
 0x158   :  { %v388_v34 = vsel %vm381_vm0, %v928_v30, 0.0  ;;  %647 = vmatpush.msrb.mxu1 %v517_v48  ;;  %677 = vmatpush.msrb.mxu2 %v438_v25  ;;  %vm411_vm5 = vcmp.eq.s32.totalorder %v406_v45, %v410_v46 }
 0x159   :  { %389 = vadd.xlane.f32.xlu0 %v388_v34  ;;  %697 = vmatpush.msrb.mxu3 %v439_v26  ;;  %v421_v34 = vld [vmem:[#allocation7 + $0x28] sm:$0xff] }
 0x15a   :  { %648 = vmatpush.msrb.mxu1 %v509_v52  ;;  %678 = vmatpush.msrb.mxu2 %v430_v29  ;;  %v414_v52 = vsel %vm411_vm5, 0.5, %v875_v51 }
 0x15b   :  { %698 = vmatpush.msrb.mxu3 %v431_v32 }
 0x15c   :  { %649 = vmatpush.msrb.mxu1 %v501_v56  ;;  %679 = vmatpush.msrb.mxu2 %v422_v35 }
 0x15d   :  { %699 = vmatpush.msrb.mxu3 %v423_v36 }
 0x15e   :  { %650 = vmatpush.msrb.mxu1 %v493_v60 }
 0x160   :  { %651 = vmatpush.msrb.mxu1 %v485_v0 }
 0x162   :  { %652 = vmatpush.msrb.mxu1 %v477_v4 }
 0x164   :  { %653 = vmatpush.msrb.mxu1 %v469_v8 }
 0x166   :  { %654 = vmatpush.msrb.mxu1 %v461_v12 }
 0x168   :  { %655 = vmatpush.msrb.mxu1 %v453_v16 }
 0x16a   :  { %656 = vmatpush.msrb.mxu1 %v445_v20 }
 0x16c   :  { %657 = vmatpush.msrb.mxu1 %v437_v24 }
 0x16e   :  { %658 = vmatpush.msrb.mxu1 %v429_v28 }
 0x170   :  { %659 = vmatpush.msrb.mxu1 %v421_v34 }
 0x1cc   :  { %v390_v37 = vpop.xlane.xlu0 %389 }
 0x1cd   :  { %763 = vrcp.f32 %v390_v37  ;;  %v402_v42 = vand.u32 2147483648, %v390_v37  ;;  %v400_v44 = vand.u32 2147483647, %v390_v37  ;;  %vm396_vm2 = vweird.f32 %v390_v37 }
 0x1cf   :  { %v403_v47 = vor.u32 1.1754944e-38, %v402_v42  ;;  %vm401_vm4 = vcmp.eq.f32.partialorder %v400_v44, 8.507059e+37 }
 0x1d3   :  { %v764_v38 = vpop.eup %763 }
 0x1d4   :  { %v392_v39 = vmul.f32 %v764_v38, %v390_v37  ;;  %vm397_vm1 = vweird.f32 %v764_v38 }
 0x1d5   :  { %vm398_vm3 = vmor %vm396_vm2, %vm397_vm1 }
 0x1d6   :  { %v393_v41 = vsub.f32 1.0, %v392_v39 }
 0x1d8   :  { %v394_v43 = vmul.f32 %v764_v38, %v393_v41 }
 0x1da   :  { %v395_v31 = vadd.f32 %v764_v38, %v394_v43 }
 0x1dc   :  { %v399_v48 = vsel %vm398_vm3, %v764_v38, %v395_v31 }
 0x1dd   :  { %v404_v49 = vsel %vm401_vm4, %v403_v47, %v399_v48 }
 0x1de   :  { %v412_v50 = vmul.f32 0.5, %v404_v49 }
 0x1e0   :  { %v413_v53 = vmul.f32 %v928_v30, %v412_v50 }
 0x1e2   :  { %v415_v54 = vsub.f32 %v413_v53, %v414_v52 }
 0x1e4   :  { %560 = vmatmul.f32.vlgmr.msra.gmra.mxu0 %v415_v54  ;;  %580 = vmatmul.f32.vlgmr.msra.gmra.mxu1 %v415_v54 }
 0x1e5   :  { %600 = vmatmul.f32.vlgmr.msra.gmra.mxu2 %v415_v54  ;;  %620 = vmatmul.f32.vlgmr.msra.gmra.mxu3 %v415_v54 }
 0x1ec   :  { %640 = vmatmul.f32.vlgmr.msrb.gmra.mxu0 %v415_v54  ;;  %660 = vmatmul.f32.vlgmr.msrb.gmra.mxu1 %v415_v54 }
 0x1ed   :  { %680 = vmatmul.f32.vlgmr.msrb.gmra.mxu2 %v415_v54  ;;  %700 = vmatmul.f32.vlgmr.msrb.gmra.mxu3 %v415_v54 }
 0x261   :  { %v581_v55 = vpop.f32.mrf.mxu1  ;;  %v561_v56 = vpop.f32.mrf.mxu0 }
 0x262   :  { %v712_v57 = vrot.slane %v581_v55, 6 }
 0x264   :  { %v718_v30 = vsel %vm381_vm0, %v561_v56, %v712_v57 }
 0x268   :  { %v601_v58 = vpop.f32.mrf.mxu2  ;;  %v621_v59 = vpop.f32.mrf.mxu3 }
 0x269   :  { %v713_v60 = vrot.slane %v601_v58, 4  ;;  %v714_v61 = vrot.slane %v621_v59, 2  ;;  %v661_v63 = vpop.f32.mrf.mxu1  ;;  %v641_v6 = vpop.f32.mrf.mxu0 }
 0x26a   :  { %v715_v1 = vrot.slane %v661_v63, 6 }
 0x26b   :  { %v720_v62 = vsel %vm719_vm6, %v713_v60, %v714_v61 }
 0x26c   :  { %v722_v0 = vsel %vm721_vm7, %v718_v30, %v720_v62  ;;  %v723_v7 = vsel %vm381_vm0, %v641_v6, %v715_v1 }
 0x26d   :  { %728 = vst [vmem:[#allocation8] sm:$0xff] %v722_v0 }
 0x270   :  { %v681_v2 = vpop.f32.mrf.mxu2  ;;  %v701_v3 = vpop.f32.mrf.mxu3 }
 0x271   :  { %v716_v4 = vrot.slane %v681_v2, 4  ;;  %v717_v5 = vrot.slane %v701_v3, 2 }
 0x273   :  { %v724_v8 = vsel %vm719_vm6, %v716_v4, %v717_v5 }
 0x274   :  { %v725_v9 = vsel %vm721_vm7, %v723_v7, %v724_v8 }
 0x275   :  { %729 = vst [vmem:[#allocation8 + $0x8] sm:$0xff] %v725_v9 }
 0x276   :  { %740 = dma.vmem_to_hbm [thread:$0]  %s736_s12, 256, %s738_s15, [#allocation4]  }
 0x277   :  { %865 = dma.done.wait [#allocation4], 256  }
 0x278   :  { %866 = vsyncadd [#allocation4], 4294967040 }
 0x279   :  { %745 = vsyncpa [#allocation3], 1 }
 0x27a   :  { %746 = vsyncpa [#allocation6], 1 }
 0x27b   :  { %747 = vsyncpa [#allocation4], 1 }

</bundles_post_ra>
